<compile_context>
chip_gen: v5e
topology: v5e:2x2
jax: 0.10.0
libtpu: 0.0.40
codegen_flags: <defaults>
</compile_context>

<pallas_src>
import functools

import jax
import jax.numpy as jnp
from jax.experimental import pallas as pl
from jax.experimental.pallas import tpu as pltpu


def _hexblock_kernel(x_ref, top_ref, bot_ref, w_ref, b_ref, o_ref, cat_ref,
                     *, w_img, residual):
    # x_ref  : (1, Cin, S)     current tile, channels-first, spatial flattened
    #                          row-major (S = HT * W, lanes = spatial)
    # top_ref: (1, 1, Cin, W)  image row just above the tile (zeros at top edge)
    # bot_ref: (1, 1, Cin, W)  image row just below the tile (zeros at bottom)
    # w_ref  : (Cout, 7*Cin)   weight-stationary LHS, cols ordered (tap, cin)
    # b_ref  : (Cout, 1)       bias column
    # o_ref  : (1, Cout, S)    output tile (lane-dense last dim)
    # cat_ref: (7*Cin, S)      VMEM scratch with the 7 tap slabs (MXU RHS)
    cin = x_ref.shape[1]
    st = x_ref.shape[2]

    x = x_ref[0]                                          # (Cin, S)

    # --- vertical taps: one XLU roll by a full row, then patch the halo row --
    # up[c, i]   = x[c, i - W]  ; first W lanes come from top_ref
    # down[c, i] = x[c, i + W]  ; last  W lanes come from bot_ref
    cat_ref[0 * cin:1 * cin, :] = pltpu.roll(x, shift=w_img, axis=1)
    cat_ref[0 * cin:1 * cin, 0:w_img] = top_ref[0, 0]
    cat_ref[1 * cin:2 * cin, :] = x                                   # center
    cat_ref[2 * cin:3 * cin, :] = pltpu.roll(x, shift=st - w_img, axis=1)
    cat_ref[2 * cin:3 * cin, st - w_img:st] = bot_ref[0, 0]

    up = cat_ref[0 * cin:1 * cin, :]
    dn = cat_ref[2 * cin:3 * cin, :]

    # --- hex parity selects (hexagdly column-offset convention) --------------
    # W is never tiled, so lane % W is the global column index.
    col = jax.lax.broadcasted_iota(jnp.int32, (1, st), 1) % w_img
    odd = (col % 2) == 1
    s_up = jnp.where(odd, up, x)       # upper neighbour in an adjacent column
    s_dn = jnp.where(odd, x, dn)       # lower neighbour in an adjacent column

    zero = jnp.zeros((), x.dtype)

    def from_left(a):    # out[:, c] = a[:, c-1], zero at c == 0      (W halo)
        return jnp.where(col == 0, zero, pltpu.roll(a, shift=1, axis=1))

    def from_right(a):   # out[:, c] = a[:, c+1], zero at c == W-1    (W halo)
        return jnp.where(col == w_img - 1, zero,
                         pltpu.roll(a, shift=st - 1, axis=1))

    # --- remaining tap slabs: full-lane-width stores at sublane offset k*Cin -
    cat_ref[3 * cin:4 * cin, :] = from_left(s_up)     # w[3] left  upper
    cat_ref[4 * cin:5 * cin, :] = from_left(s_dn)     # w[4] left  lower
    cat_ref[5 * cin:6 * cin, :] = from_right(s_up)    # w[5] right upper
    cat_ref[6 * cin:7 * cin, :] = from_right(s_dn)    # w[6] right lower

    # --- single weight-stationary MXU matmul, f32 accumulation ---------------
    acc = jnp.dot(w_ref[...], cat_ref[...], preferred_element_type=jnp.float32)
    acc = acc + b_ref[...].astype(jnp.float32)
    if residual:   # requires Cin == Cout (same constraint as the torch module)
        acc = acc + x.astype(jnp.float32)
    acc = jnp.maximum(acc, 0.0)                           # ReLU
    o_ref[0] = acc.astype(o_ref.dtype)                    # lane-dense store


def hex_block(x_nchw, w_stack, bias, *, residual=True, h_tile=None):
    """HexBlock forward. x_nchw: (N, Cin, H, W); returns (N, Cout, H, W)."""
    N, cin, H, W = x_nchw.shape
    assert w_stack.shape[:2] == (7, cin)
    cout = w_stack.shape[-1]
    if residual:
        assert cin == cout, "residual=True requires in_channels == out_channels"

    itemsize = jnp.dtype(x_nchw.dtype).itemsize

    # --- generation-aware VMEM budget (v7x: 64 MiB/TC, v5e/v6e: 128 MiB) -----
    try:
        vmem_cap = int(pltpu.get_tpu_info().vmem_capacity_bytes)
    except Exception:                     # conservative fallback (covers v7x)
        vmem_cap = 64 * 1024 * 1024
    vmem_limit = min(int(0.70 * vmem_cap), 100 * 1024 * 1024)

    # --- choose the H tile: largest divisor of H under the VMEM budget -------
    def step_bytes(ht):
        st = ht * W
        io = 2 * (cin + cout) * st * itemsize       # x/out blocks, double-buffered
        halo = 2 * 2 * cin * W * itemsize           # top/bot blocks, double-buffered
        cat = 7 * cin * st * itemsize               # tap scratch
        wgt = 2 * (7 * cin * cout * itemsize + cout * 4)
        return io + halo + cat + wgt

    if h_tile is None:
        budget = int(0.6 * vmem_limit)
        cands = [h for h in range(1, H + 1)
                 if H % h == 0 and ((h * W) % 128 == 0 or h == H)]
        fitting = [h for h in cands if step_bytes(h) <= budget] or [min(cands)]
        h_tile = max(fitting)
        # v7x megacore: make sure there are at least 2 grid steps to shard.
        if N * (H // h_tile) < 2:
            smaller = [h for h in fitting if h < h_tile]
            if smaller:
                h_tile = max(smaller)
    assert H % h_tile == 0, "h_tile must divide H"
    n_t = H // h_tile
    s_t = h_tile * W

    # --- channels-first, flat-spatial views (reshapes only, no transposes) ---
    x = x_nchw.reshape(N, cin, H * W)

    # tiny per-tile halo rows instead of zero-padding the whole image
    zrow = jnp.zeros((N, 1, cin, W), x.dtype)
    if n_t > 1:
        top = jnp.concatenate(
            [zrow,
             jnp.transpose(x_nchw[:, :, h_tile - 1:H - 1:h_tile, :], (0, 2, 1, 3))],
            axis=1)
        bot = jnp.concatenate(
            [jnp.transpose(x_nchw[:, :, h_tile:H:h_tile, :], (0, 2, 1, 3)),
             zrow],
            axis=1)
    else:
        top, bot = zrow, zrow                       # (N, n_t, Cin, W)

    # weight-stationary LHS: rows = Cout, cols = (tap, cin); cast to act dtype
    w2 = jnp.transpose(w_stack, (2, 0, 1)).reshape(cout, 7 * cin).astype(x.dtype)
    b2 = bias.reshape(cout, 1).astype(jnp.float32)

    flops = 2 * N * H * W * 7 * cin * cout
    bytes_accessed = (itemsize * (N * cin * H * W + N * cout * H * W)
                      + w2.size * itemsize + b2.size * 4
                      + 2 * top.size * itemsize)

    kernel = functools.partial(_hexblock_kernel, w_img=W, residual=residual)
    out = pl.pallas_call(
        kernel,
        out_shape=jax.ShapeDtypeStruct((N, cout, H * W), x.dtype),
        grid_spec=pltpu.PrefetchScalarGridSpec(
            num_scalar_prefetch=0,
            grid=(N, n_t),
            in_specs=[
                pl.BlockSpec((1, cin, s_t), lambda n, t: (n, 0, t)),
                pl.BlockSpec((1, 1, cin, W), lambda n, t: (n, t, 0, 0)),
                pl.BlockSpec((1, 1, cin, W), lambda n, t: (n, t, 0, 0)),
                # TODO(synk): single-buffer the constant weight/bias blocks
                # (pipeline_mode=pl.Buffered(1)) to reclaim VMEM at large C.
                pl.BlockSpec((cout, 7 * cin), lambda n, t: (0, 0)),
                pl.BlockSpec((cout, 1), lambda n, t: (0, 0)),
            ],
            out_specs=pl.BlockSpec((1, cout, s_t), lambda n, t: (n, 0, t)),
            scratch_shapes=[
                pltpu.VMEM((7 * cin, s_t), x.dtype),    # tap concat (MXU RHS)
            ],
        ),
        compiler_params=pltpu.CompilerParams(
            dimension_semantics=("parallel", "parallel"),
            vmem_limit_bytes=vmem_limit,
        ),
        cost_estimate=pl.CostEstimate(flops=int(flops), transcendentals=0,
                                      bytes_accessed=int(bytes_accessed)),
    )(x, top, bot, w2, b2)
    return out.reshape(N, cout, H, W)


def init_params(key, in_channels, out_channels):
    """Deterministic synthetic init matching hexagdly.Conv2d(ks=1) shapes:
       kernel0: (Cout, Cin, 3, 1), kernel1: (Cout, Cin, 2, 2), bias: (Cout,)."""
    k0, k1, kb = jax.random.split(key, 3)
    fan_in = 7 * in_channels
    bound = 1.0 / (fan_in ** 0.5)
    kernel0 = jax.random.uniform(k0, (out_channels, in_channels, 3, 1),
                                 jnp.float32, -bound, bound)
    kernel1 = jax.random.uniform(k1, (out_channels, in_channels, 2, 2),
                                 jnp.float32, -bound, bound)
    bias = jax.random.uniform(kb, (out_channels,), jnp.float32, -bound, bound)
    # tap order: up, center, down, left-upper, left-lower, right-upper, right-lower
    mats = [
        kernel0[:, :, 0, 0], kernel0[:, :, 1, 0], kernel0[:, :, 2, 0],
        kernel1[:, :, 0, 0], kernel1[:, :, 1, 0],
        kernel1[:, :, 0, 1], kernel1[:, :, 1, 1],
    ]
    w_stack = jnp.stack([m.T for m in mats], axis=0)   # (7, Cin, Cout)
    return w_stack, bias


def hex_block_ref(x_nchw, w_stack, bias, *, residual=True):
    """Pure-JAX reference (same semantics), used only to sanity-check."""
    N, cin, H, W = x_nchw.shape
    x = jnp.transpose(x_nchw, (0, 2, 3, 1))
    xp = jnp.pad(x, ((0, 0), (1, 1), (1, 1), (0, 0)))

    def nb(dr, dc):
        return xp[:, 1 + dr:1 + dr + H, 1 + dc:1 + dc + W, :]

    even = ((jnp.arange(W) % 2) == 0).reshape(1, 1, W, 1)
    center = nb(0, 0)
    taps = [nb(-1, 0), center, nb(1, 0),
            jnp.where(even, nb(-1, -1), nb(0, -1)),
            jnp.where(even, nb(0, -1), nb(1, -1)),
            jnp.where(even, nb(-1, 1), nb(0, 1)),
            jnp.where(even, nb(0, 1), nb(1, 1))]
    y = bias.reshape(1, 1, 1, -1).astype(jnp.float32)
    for k, tap in enumerate(taps):
        y = y + jnp.einsum('nhwc,co->nhwo', tap, w_stack[k],
                           precision=jax.lax.Precision.HIGHEST)
    if residual:
        y = y + center
    y = jnp.maximum(y, 0.0)
    return jnp.transpose(y, (0, 3, 1, 2))


if __name__ == "__main__":
    key = jax.random.PRNGKey(0)
    kx, kp = jax.random.split(key)

    N, C, H, W = 2, 8, 16, 16          # in_channels == out_channels (residual)
    x = jax.random.normal(kx, (N, C, H, W), jnp.float32)
    w_stack, bias = init_params(kp, C, C)

    ref = hex_block_ref(x, w_stack, bias, residual=True)

    # Run both the auto-tile path (whole H per step) and a multi-tile path
    # (h_tile=8) that exercises the in-kernel H-halo patching.
    for ht in (None, 8):
        out = jax.block_until_ready(
            hex_block(x, w_stack, bias, residual=True, h_tile=ht))
        assert out.shape == (N, C, H, W)
        assert bool(jnp.allclose(out, ref, atol=1e-4, rtol=1e-4)), f"h_tile={ht}"

    print("KERNEL_OK")
</pallas_src>

<mosaic_0001>
module attributes {stable_mosaic.version = 11 : i64} {
  func.func @_hexblock_kernel(%arg0: i32, %arg1: i32, %arg2: memref<1x8x256xf32, #tpu.memory_space<vmem>>, %arg3: memref<1x1x8x16xf32, #tpu.memory_space<vmem>>, %arg4: memref<1x1x8x16xf32, #tpu.memory_space<vmem>>, %arg5: memref<8x56xf32, #tpu.memory_space<vmem>>, %arg6: memref<8x1xf32, #tpu.memory_space<vmem>>, %arg7: memref<1x8x256xf32, #tpu.memory_space<vmem>>, %arg8: memref<56x256xf32, #tpu.memory_space<vmem>>) attributes {dimension_semantics = [#tpu.dimension_semantics<parallel>, #tpu.dimension_semantics<parallel>], iteration_bounds = array<i64: 2, 1>, scalar_prefetch = 0 : i64, scratch_operands = 1 : i64, tpu.core_type = #tpu.core_type<tc>, window_params = [{transform_indices = @transform_0, window_bounds = array<i64: 1, 8, 256>}, {transform_indices = @transform_1, window_bounds = array<i64: 1, 1, 8, 16>}, {transform_indices = @transform_2, window_bounds = array<i64: 1, 1, 8, 16>}, {pipeline_mode = #tpu.pipeline_mode<synchronous>, transform_indices = @transform_3, window_bounds = array<i64: 8, 56>}, {pipeline_mode = #tpu.pipeline_mode<synchronous>, transform_indices = @transform_4, window_bounds = array<i64: 8, 1>}, {transform_indices = @transform_5, window_bounds = array<i64: 1, 8, 256>}]} {
    %c0 = arith.constant 0 : index
    %c0_0 = arith.constant 0 : index
    %c0_1 = arith.constant 0 : index
    %0 = vector.load %arg2[%c0, %c0_0, %c0_1] : memref<1x8x256xf32, #tpu.memory_space<vmem>>, vector<1x8x256xf32>
    %1 = vector.shape_cast %0 : vector<1x8x256xf32> to vector<8x256xf32>
    %c16_i32 = arith.constant 16 : i32
    %2 = tpu.dynamic_rotate %1 by %c16_i32 dim 1 : vector<8x256xf32>, i32 -> vector<8x256xf32>
    %c0_2 = arith.constant 0 : index
    %c0_3 = arith.constant 0 : index
    %3 = vector.load %arg8[%c0_2, %c0_3] : memref<56x256xf32, #tpu.memory_space<vmem>>, vector<8x256xf32>
    tpu.vector_store %arg8[%c0_2, %c0_3], %2 {strides = array<i32>} : memref<56x256xf32, #tpu.memory_space<vmem>>, vector<8x256xf32>,
    %c0_4 = arith.constant 0 : index
    %c0_5 = arith.constant 0 : index
    %c0_6 = arith.constant 0 : index
    %c0_7 = arith.constant 0 : index
    %4 = vector.load %arg3[%c0_4, %c0_5, %c0_6, %c0_7] : memref<1x1x8x16xf32, #tpu.memory_space<vmem>>, vector<1x1x8x16xf32>
    %5 = vector.shape_cast %4 : vector<1x1x8x16xf32> to vector<8x16xf32>
    %c0_8 = arith.constant 0 : index
    %c0_9 = arith.constant 0 : index
    %6 = vector.load %arg8[%c0_8, %c0_9] : memref<56x256xf32, #tpu.memory_space<vmem>>, vector<8x16xf32>
    tpu.vector_store %arg8[%c0_8, %c0_9], %5 {strides = array<i32>} : memref<56x256xf32, #tpu.memory_space<vmem>>, vector<8x16xf32>,
    %c8 = arith.constant 8 : index
    %c0_10 = arith.constant 0 : index
    %7 = vector.load %arg8[%c8, %c0_10] : memref<56x256xf32, #tpu.memory_space<vmem>>, vector<8x256xf32>
    tpu.vector_store %arg8[%c8, %c0_10], %1 {strides = array<i32>} : memref<56x256xf32, #tpu.memory_space<vmem>>, vector<8x256xf32>,
    %c240_i32 = arith.constant 240 : i32
    %8 = tpu.dynamic_rotate %1 by %c240_i32 dim 1 : vector<8x256xf32>, i32 -> vector<8x256xf32>
    %c16 = arith.constant 16 : index
    %c0_11 = arith.constant 0 : index
    %9 = vector.load %arg8[%c16, %c0_11] : memref<56x256xf32, #tpu.memory_space<vmem>>, vector<8x256xf32>
    tpu.vector_store %arg8[%c16, %c0_11], %8 {strides = array<i32>} : memref<56x256xf32, #tpu.memory_space<vmem>>, vector<8x256xf32>,
    %c0_12 = arith.constant 0 : index
    %c0_13 = arith.constant 0 : index
    %c0_14 = arith.constant 0 : index
    %c0_15 = arith.constant 0 : index
    %10 = vector.load %arg4[%c0_12, %c0_13, %c0_14, %c0_15] : memref<1x1x8x16xf32, #tpu.memory_space<vmem>>, vector<1x1x8x16xf32>
    %11 = vector.shape_cast %10 : vector<1x1x8x16xf32> to vector<8x16xf32>
    %c16_16 = arith.constant 16 : index
    %c240 = arith.constant 240 : index
    %12 = vector.load %arg8[%c16_16, %c240] : memref<56x256xf32, #tpu.memory_space<vmem>>, vector<8x16xf32>
    tpu.vector_store %arg8[%c16_16, %c240], %11 {strides = array<i32>} : memref<56x256xf32, #tpu.memory_space<vmem>>, vector<8x16xf32>,
    %c0_17 = arith.constant 0 : index
    %c0_18 = arith.constant 0 : index
    %13 = vector.load %arg8[%c0_17, %c0_18] : memref<56x256xf32, #tpu.memory_space<vmem>>, vector<8x256xf32>
    %c16_19 = arith.constant 16 : index
    %c0_20 = arith.constant 0 : index
    %14 = vector.load %arg8[%c16_19, %c0_20] : memref<56x256xf32, #tpu.memory_space<vmem>>, vector<8x256xf32>
    %15 = tpu.iota {dimensions = array<i32: 1>} : vector<1x256xi32>
    %c16_i32_21 = arith.constant 16 : i32
    %c0_i32 = arith.constant 0 : i32
    %16 = arith.cmpi eq, %c16_i32_21, %c0_i32 : i32
    %c1_i32 = arith.constant 1 : i32
    %17 = arith.select %16, %c1_i32, %c16_i32_21 : i32
    %18 = vector.broadcast %17 : i32 to vector<1x256xi32>
    %19 = arith.remsi %15, %18 : vector<1x256xi32>
    %c0_i32_22 = arith.constant 0 : i32
    %20 = vector.broadcast %c0_i32_22 : i32 to vector<1x256xi32>
    %21 = arith.cmpi ne, %19, %20 : vector<1x256xi32>
    %c0_i32_23 = arith.constant 0 : i32
    %22 = vector.broadcast %c0_i32_23 : i32 to vector<1x256xi32>
    %23 = arith.cmpi slt, %19, %22 : vector<1x256xi32>
    %c0_i32_24 = arith.constant 0 : i32
    %24 = arith.cmpi slt, %17, %c0_i32_24 : i32
    %25 = vector.broadcast %24 : i1 to vector<1x256xi1>
    %26 = vector.broadcast %25 : vector<1x256xi1> to vector<1x256xi1>
    %27 = arith.xori %23, %26 : vector<1x256xi1>
    %28 = arith.andi %27, %21 : vector<1x256xi1>
    %29 = vector.broadcast %17 : i32 to vector<1x256xi32>
    %30 = arith.addi %19, %29 : vector<1x256xi32>
    %31 = arith.select %28, %30, %19 : vector<1x256xi1>, vector<1x256xi32>
    %c2_i32 = arith.constant 2 : i32
    %c0_i32_25 = arith.constant 0 : i32
    %32 = arith.cmpi eq, %c2_i32, %c0_i32_25 : i32
    %c1_i32_26 = arith.constant 1 : i32
    %33 = arith.select %32, %c1_i32_26, %c2_i32 : i32
    %34 = vector.broadcast %33 : i32 to vector<1x256xi32>
    %35 = arith.remsi %31, %34 : vector<1x256xi32>
    %c0_i32_27 = arith.constant 0 : i32
    %36 = vector.broadcast %c0_i32_27 : i32 to vector<1x256xi32>
    %37 = arith.cmpi ne, %35, %36 : vector<1x256xi32>
    %c0_i32_28 = arith.constant 0 : i32
    %38 = vector.broadcast %c0_i32_28 : i32 to vector<1x256xi32>
    %39 = arith.cmpi slt, %35, %38 : vector<1x256xi32>
    %c0_i32_29 = arith.constant 0 : i32
    %40 = arith.cmpi slt, %33, %c0_i32_29 : i32
    %41 = vector.broadcast %40 : i1 to vector<1x256xi1>
    %42 = vector.broadcast %41 : vector<1x256xi1> to vector<1x256xi1>
    %43 = arith.xori %39, %42 : vector<1x256xi1>
    %44 = arith.andi %43, %37 : vector<1x256xi1>
    %45 = vector.broadcast %33 : i32 to vector<1x256xi32>
    %46 = arith.addi %35, %45 : vector<1x256xi32>
    %47 = arith.select %44, %46, %35 : vector<1x256xi1>, vector<1x256xi32>
    %c1_i32_30 = arith.constant 1 : i32
    %48 = vector.broadcast %c1_i32_30 : i32 to vector<1x256xi32>
    %49 = arith.cmpi eq, %47, %48 : vector<1x256xi32>
    %50 = vector.shape_cast %49 : vector<1x256xi1> to vector<1x256xi1>
    %51 = vector.broadcast %50 : vector<1x256xi1> to vector<8x256xi1>
    %52 = arith.select %51, %13, %1 : vector<8x256xi1>, vector<8x256xf32>
    %53 = vector.shape_cast %49 : vector<1x256xi1> to vector<1x256xi1>
    %54 = vector.broadcast %53 : vector<1x256xi1> to vector<8x256xi1>
    %55 = arith.select %54, %1, %14 : vector<8x256xi1>, vector<8x256xf32>
    %c0_i32_31 = arith.constant 0 : i32
    %56 = vector.broadcast %c0_i32_31 : i32 to vector<1x256xi32>
    %57 = arith.cmpi eq, %31, %56 : vector<1x256xi32>
    %c1_i32_32 = arith.constant 1 : i32
    %58 = tpu.dynamic_rotate %52 by %c1_i32_32 dim 1 : vector<8x256xf32>, i32 -> vector<8x256xf32>
    %cst = arith.constant 0.000000e+00 : f32
    %59 = vector.shape_cast %57 : vector<1x256xi1> to vector<1x256xi1>
    %60 = vector.broadcast %59 : vector<1x256xi1> to vector<8x256xi1>
    %61 = vector.broadcast %cst : f32 to vector<8x256xf32>
    %62 = arith.select %60, %61, %58 : vector<8x256xi1>, vector<8x256xf32>
    %c24 = arith.constant 24 : index
    %c0_33 = arith.constant 0 : index
    %63 = vector.load %arg8[%c24, %c0_33] : memref<56x256xf32, #tpu.memory_space<vmem>>, vector<8x256xf32>
    tpu.vector_store %arg8[%c24, %c0_33], %62 {strides = array<i32>} : memref<56x256xf32, #tpu.memory_space<vmem>>, vector<8x256xf32>,
    %c0_i32_34 = arith.constant 0 : i32
    %64 = vector.broadcast %c0_i32_34 : i32 to vector<1x256xi32>
    %65 = arith.cmpi eq, %31, %64 : vector<1x256xi32>
    %c1_i32_35 = arith.constant 1 : i32
    %66 = tpu.dynamic_rotate %55 by %c1_i32_35 dim 1 : vector<8x256xf32>, i32 -> vector<8x256xf32>
    %cst_36 = arith.constant 0.000000e+00 : f32
    %67 = vector.shape_cast %65 : vector<1x256xi1> to vector<1x256xi1>
    %68 = vector.broadcast %67 : vector<1x256xi1> to vector<8x256xi1>
    %69 = vector.broadcast %cst_36 : f32 to vector<8x256xf32>
    %70 = arith.select %68, %69, %66 : vector<8x256xi1>, vector<8x256xf32>
    %c32 = arith.constant 32 : index
    %c0_37 = arith.constant 0 : index
    %71 = vector.load %arg8[%c32, %c0_37] : memref<56x256xf32, #tpu.memory_space<vmem>>, vector<8x256xf32>
    tpu.vector_store %arg8[%c32, %c0_37], %70 {strides = array<i32>} : memref<56x256xf32, #tpu.memory_space<vmem>>, vector<8x256xf32>,
    %c15_i32 = arith.constant 15 : i32
    %72 = vector.broadcast %c15_i32 : i32 to vector<1x256xi32>
    %73 = arith.cmpi eq, %31, %72 : vector<1x256xi32>
    %c255_i32 = arith.constant 255 : i32
    %74 = tpu.dynamic_rotate %52 by %c255_i32 dim 1 : vector<8x256xf32>, i32 -> vector<8x256xf32>
    %cst_38 = arith.constant 0.000000e+00 : f32
    %75 = vector.shape_cast %73 : vector<1x256xi1> to vector<1x256xi1>
    %76 = vector.broadcast %75 : vector<1x256xi1> to vector<8x256xi1>
    %77 = vector.broadcast %cst_38 : f32 to vector<8x256xf32>
    %78 = arith.select %76, %77, %74 : vector<8x256xi1>, vector<8x256xf32>
    %c40 = arith.constant 40 : index
    %c0_39 = arith.constant 0 : index
    %79 = vector.load %arg8[%c40, %c0_39] : memref<56x256xf32, #tpu.memory_space<vmem>>, vector<8x256xf32>
    tpu.vector_store %arg8[%c40, %c0_39], %78 {strides = array<i32>} : memref<56x256xf32, #tpu.memory_space<vmem>>, vector<8x256xf32>,
    %c15_i32_40 = arith.constant 15 : i32
    %80 = vector.broadcast %c15_i32_40 : i32 to vector<1x256xi32>
    %81 = arith.cmpi eq, %31, %80 : vector<1x256xi32>
    %c255_i32_41 = arith.constant 255 : i32
    %82 = tpu.dynamic_rotate %55 by %c255_i32_41 dim 1 : vector<8x256xf32>, i32 -> vector<8x256xf32>
    %cst_42 = arith.constant 0.000000e+00 : f32
    %83 = vector.shape_cast %81 : vector<1x256xi1> to vector<1x256xi1>
    %84 = vector.broadcast %83 : vector<1x256xi1> to vector<8x256xi1>
    %85 = vector.broadcast %cst_42 : f32 to vector<8x256xf32>
    %86 = arith.select %84, %85, %82 : vector<8x256xi1>, vector<8x256xf32>
    %c48 = arith.constant 48 : index
    %c0_43 = arith.constant 0 : index
    %87 = vector.load %arg8[%c48, %c0_43] : memref<56x256xf32, #tpu.memory_space<vmem>>, vector<8x256xf32>
    tpu.vector_store %arg8[%c48, %c0_43], %86 {strides = array<i32>} : memref<56x256xf32, #tpu.memory_space<vmem>>, vector<8x256xf32>,
    %c0_44 = arith.constant 0 : index
    %c0_45 = arith.constant 0 : index
    %88 = vector.load %arg5[%c0_44, %c0_45] : memref<8x56xf32, #tpu.memory_space<vmem>>, vector<8x56xf32>
    %c0_46 = arith.constant 0 : index
    %c0_47 = arith.constant 0 : index
    %89 = vector.load %arg8[%c0_46, %c0_47] : memref<56x256xf32, #tpu.memory_space<vmem>>, vector<56x256xf32>
    %cst_48 = arith.constant dense<0.000000e+00> : vector<8x256xf32>
    %90 = tpu.matmul %88, %89, %cst_48 {dimension_numbers = #tpu.dot_dimension_numbers<[1], [0], [0], [1], [0, 0, 1, 1], [], []>} : vector<8x56xf32>, vector<56x256xf32>, vector<8x256xf32> -> vector<8x256xf32>
    %c0_49 = arith.constant 0 : index
    %c0_50 = arith.constant 0 : index
    %91 = vector.load %arg6[%c0_49, %c0_50] : memref<8x1xf32, #tpu.memory_space<vmem>>, vector<8x1xf32>
    %92 = vector.broadcast %91 : vector<8x1xf32> to vector<8x256xf32>
    %93 = arith.addf %90, %92 : vector<8x256xf32>
    %94 = arith.addf %93, %1 : vector<8x256xf32>
    %cst_51 = arith.constant 0.000000e+00 : f32
    %95 = vector.broadcast %cst_51 : f32 to vector<8x256xf32>
    %96 = arith.maximumf %94, %95 : vector<8x256xf32>
    %c0_52 = arith.constant 0 : index
    %c0_53 = arith.constant 0 : index
    %c0_54 = arith.constant 0 : index
    %97 = vector.load %arg7[%c0_52, %c0_53, %c0_54] : memref<1x8x256xf32, #tpu.memory_space<vmem>>, vector<1x8x256xf32>
    %98 = vector.shape_cast %97 : vector<1x8x256xf32> to vector<8x256xf32>
    %99 = vector.shape_cast %96 : vector<8x256xf32> to vector<1x8x256xf32>
    tpu.vector_store %arg7[%c0_52, %c0_53, %c0_54], %99 {strides = array<i32>} : memref<1x8x256xf32, #tpu.memory_space<vmem>>, vector<1x8x256xf32>,
    return
  }
  func.func @transform_0(%arg0: i32, %arg1: i32) -> (i32, i32, i32) {
    %c0_i32 = arith.constant 0 : i32
    %c0_i32_0 = arith.constant 0 : i32
    return %arg0, %c0_i32, %arg1 : i32, i32, i32
  }
  func.func @transform_1(%arg0: i32, %arg1: i32) -> (i32, i32, i32, i32) {
    %c0_i32 = arith.constant 0 : i32
    %c0_i32_0 = arith.constant 0 : i32
    %c0_i32_1 = arith.constant 0 : i32
    return %arg0, %arg1, %c0_i32, %c0_i32_0 : i32, i32, i32, i32
  }
  func.func @transform_2(%arg0: i32, %arg1: i32) -> (i32, i32, i32, i32) {
    %c0_i32 = arith.constant 0 : i32
    %c0_i32_0 = arith.constant 0 : i32
    %c0_i32_1 = arith.constant 0 : i32
    return %arg0, %arg1, %c0_i32, %c0_i32_0 : i32, i32, i32, i32
  }
  func.func @transform_3(%arg0: i32, %arg1: i32) -> (i32, i32) {
    %c0_i32 = arith.constant 0 : i32
    %c0_i32_0 = arith.constant 0 : i32
    %c0_i32_1 = arith.constant 0 : i32
    return %c0_i32, %c0_i32_0 : i32, i32
  }
  func.func @transform_4(%arg0: i32, %arg1: i32) -> (i32, i32) {
    %c0_i32 = arith.constant 0 : i32
    %c0_i32_0 = arith.constant 0 : i32
    %c0_i32_1 = arith.constant 0 : i32
    return %c0_i32, %c0_i32_0 : i32, i32
  }
  func.func @transform_5(%arg0: i32, %arg1: i32) -> (i32, i32, i32) {
    %c0_i32 = arith.constant 0 : i32
    %c0_i32_0 = arith.constant 0 : i32
    return %arg0, %c0_i32, %arg1 : i32, i32, i32
  }
}

</mosaic_0001>

<bundles_post_ra>
// kernel: tpu_custom_call.1
= control target key start
LH: loop header
LB: loop body
LE: loop exit
PB: predicated region body
PF: predicated region fallthrough
CT: control target
= control target key end

     0   :  { %s1269_s0 = inlined_call_operand.hbm [shape: f32[2,8,256], index: 0, kind: input, shape index: {}]   ;;  %s1270_s1 = inlined_call_operand.hbm [shape: f32[2,1,8,16], index: 1, kind: input, shape index: {}]   ;;  %s1271_s2 = inlined_call_operand.hbm [shape: f32[2,1,8,16], index: 2, kind: input, shape index: {}]   ;;  %s1272_s3 = inlined_call_operand.vmem [shape: f32[8,56], index: 3, kind: input, shape index: {}]   ;;  %s1273_s4 = inlined_call_operand.vmem [shape: f32[8,1], index: 4, kind: input, shape index: {}]   ;;  %s1274_s5 = inlined_call_operand.hbm [shape: f32[2,8,256], index: 5, kind: output, shape index: {}]  }
   0x1   :  { %1278 = sst [smem:[#allocation17_spill]] %s1270_s1 }
   0x2   :  { %10 = vsyncpa [#allocation4], 0 }
   0x3   :  { %12 = vsyncpa [#allocation4 + $0x1], 0 }
   0x4   :  { %13 = vsyncpa [#allocation7], 0 }
   0x5   :  { %15 = vsyncpa [#allocation7 + $0x1], 0 }
   0x6   :  { %16 = vsyncpa [#allocation5], 0 }
   0x7   :  { %18 = vsyncpa [#allocation5 + $0x1], 0  ;;  %s1047_s18 = smov 0   ;;  %s1049_s19 = smov 0  }
   0x8   :  { %s1051_s20 = smov 0   ;;  %s1053_s21 = smov 0  }
   0x9   :  { %s1055_s22 = smov 0   ;;  %s1057_s23 = smov 0  }
   0xa LB: > { %1279 = sst [smem:[#allocation13_spill]] %s998_s20  ;;  %s1078_s24 = sadd.s32 4294967295, %s1010_s23   ;;  %s1010_s23 = sphi %s1057_s23, %s24_s23   ;;  %s1006_s22 = sphi %s1055_s22, %s1299_s22   ;;  %s1002_s21 = sphi %s1053_s21, %s1298_s21   ;;  %s998_s20 = sphi %s1051_s20, %s1294_s20   ;;  %s994_s19 = sphi %s1049_s19, %s1297_s19   ;;  %s990_s18 = sphi %s1047_s18, %s1296_s18  }
   0xb   : > { %s715_s25 = sadd.s32 4294967294, %s1010_s23   ;;  %s36_s26 = sadd.s32 1, %s1006_s22 }
   0xc   : > { %s45_s27 = sadd.s32 1, %s998_s20  ;;  %p38_p0 = scmp.ge.s32.totalorder %s36_s26, 2 }
   0xd   : > { %p52_p1 = scmp.ne.s32.totalorder %s998_s20, %s994_s19  ;;  %p53_p2 = scmp.eq.s32.totalorder %s1010_s23, 0 }
   0xe   : > { %p58_p3 = scmp.ne.s32.totalorder %s994_s19, %s990_s18  ;;  %s1301_s26 = smov (%p38_p0, %s36_s26), 0 }
   0xf   : > { %1280 = sst [smem:[#allocation14_spill]] %s1301_s26  ;;  %p1090_p4 = por %p53_p2, %p52_p1 }
  0x10   : > { %p59_p5 = scmp.eq.s32.totalorder %s1078_s24, 0  ;;  %s40_s29 = ssub.s32 %s1006_s22, %s1301_s26 }
  0x11   : > { %p182_p6 = scmp.eq.s32.totalorder %s1078_s24, 1  ;;  %p43_p7 = scmp.eq.s32.totalorder %s40_s29, 0 }
  0x12   : > { %p1098_p8 = por %p59_p5, %p58_p3  ;;  %p188_p10 = scmp.eq.s32.totalorder %s715_s25, 1 }
  0x13   : > { %p1102_p9 = por %p182_p6, %p52_p1  ;;  %p717_p12 = scmp.ge.s32.totalorder %s1010_s23, 2 }
  0x14   : > { %s1107_s7 = scalar_select %p43_p7, %s998_s20, %s45_s27  }
  0x15   : > { %p1109_p11 = por %p188_p10, %p58_p3  ;;  %p761_p13 = scmp.lt.s32.totalorder %s1010_s23, 2 }
  0x16   : > { %1284 = sst [smem:[#allocation15_spill]] %s1107_s7  ;;  %s214_s9 = sand.u32 1, %s998_s20  }
  0x17   : > { %s1285_s8 = scalar_select %p1109_p11, 1, 0 }
  0x18   : > { %s236_s10 = sand.u32 1, %s1010_s23   ;;  %s721_s11 = sshll.u32 %s214_s9, 3 }
  0x19   : > { %1286 = sst [smem:[#allocation16_spill]] %s1285_s8  ;;  %p1119_p0 = pnand %p761_p13, %p1090_p4 }
  0x1a   : > { %s722_s13 = sshll.u32 %s1006_s22, 3  ;;  %s1288_s1 = sld [smem:[#allocation17_spill]] }
  0x1b   : > { %s240_s25 = scalar_lea.vmem [#allocation6], %s721_s11  ;;  %s237_s29 = scalar_lea.sflag [#allocation7], %s236_s10 }
  0x1c   : > { %s249_s27 = sshll.u32 %s240_s25, 4  ;;  %s265_s7 = scalar_lea.hbm %s1271_s2, %s722_s13  ;;  %s250_s27 = int_to_ptr.vmem [resolvable:$true] %s249_s27 }
  0x1d   : > { %p725_p1 = scmp.ge.s32.totalorder %s1010_s23, 1  ;;  %p274_p2 = scmp.lt.s32.totalorder %s1010_s23, 3 }
  0x1e   : > { %s718_s14 = sshll.u32 %s214_s9, 4  ;;  %s737_s15 = sshll.u32 %s1006_s22, 4 }
  0x1f   : > { %p1134_p3 = pnand %p725_p1, %p274_p2  ;;  %s218_s8 = scalar_lea.vmem [#allocation3], %s718_s14 }
  0x20   : > { %s245_s16 = scalar_lea.hbm %s1288_s1, %s722_s13  ;;  %s225_s1 = scalar_lea.hbm %s1269_s0, %s737_s15 }
  0x21   : > { %s247_s17 = sshll.u32 %s245_s16, 4  ;;  %s227_s10 = sshll.u32 %s225_s1, 4  ;;  %s248_s17 = int_to_ptr.hbm [resolvable:$true] %s247_s17  ;;  %s228_s10 = int_to_ptr.hbm [resolvable:$true] %s227_s10 }
  0x22   : > { %753 = dma.hbm_to_vmem [thread:$0]  (!%p1119_p0), %s248_s17, 128, %s250_s27, %s237_s29  }
  0x23   : > { %s229_s17 = sshll.u32 %s218_s8, 4  ;;  %s215_s26 = scalar_lea.sflag [#allocation4], %s214_s9  ;;  %s230_s17 = int_to_ptr.vmem [resolvable:$true] %s229_s17 }
  0x24   : > { %750 = dma.hbm_to_vmem [thread:$0]  (!%p1119_p0), %s228_s10, 256, %s230_s17, %s215_s26  }
  0x25   : > { %s267_s13 = sshll.u32 %s265_s7, 4  ;;  %s260_s27 = scalar_lea.vmem [#allocation8], %s721_s11  ;;  %s268_s13 = int_to_ptr.hbm [resolvable:$true] %s267_s13 }
  0x26   : > { %s269_s28 = sshll.u32 %s260_s27, 4  ;;  %278 = sbr.rel (%p1134_p3) target bundleno = 451 (0x1c3), region = 40  ;;  %s270_s28 = int_to_ptr.vmem [resolvable:$true] %s269_s28 }
  0x27   : > { %756 = dma.hbm_to_vmem [thread:$0]  (!%p1119_p0), %s268_s13, 128, %s270_s28, %s237_s29  }
  0x28   : > { %s1149_s1 = sand.u32 (!%p1134_p3), 1, %s994_s19  }
  0x29   : > { %s726_s8 = sshll.u32 (!%p1134_p3), %s1149_s1, 4  ;;  %s281_s9 = scalar_lea.sflag (!%p1134_p3), [#allocation4], %s1149_s1 }
  0x2a   : > { %s284_s7 = scalar_lea.vmem (!%p1134_p3), [#allocation3], %s726_s8 }
  0x2b   : > { %977 = dma.done.wait (%p1098_p8), %s281_s9, 256  }
  0x2c   : > { %979 = vsyncadd (%p1098_p8), %s281_s9, 4294967040  ;;  %s290_s20 = sand.u32 1, %s1078_s24   ;;  %s727_s11 = sshll.u32 %s1149_s1, 3 }
  0x2d   : > { %s291_s12 = scalar_lea.sflag [#allocation7], %s290_s20  ;;  %s294_s29 = scalar_lea.vmem [#allocation6], %s727_s11 }
  0x2e   : > { %981 = dma.done.wait (%p1098_p8), %s291_s12, 256  }
  0x2f   : > { %983 = vsyncadd (%p1098_p8), %s291_s12, 4294967040  ;;  %v1165_v0 = vld [vmem:[%s284_s7] sm:$0xff]  ;;  %s304_s14 = scalar_lea.vmem [#allocation8], %s727_s11  ;;  %s1012_s15 = smov 16   ;;  %v1169_v2 = vld [vmem:[%s284_s7 + $0x8] sm:$0xff]  ;;  %v350_v3 = vlaneseq  ;;  %vm358_vm3 = vcmask 130048  }
  0x30   : > { %v371_v1 = vld [vmem:[%s304_s14] sm:$0xff]  ;;  %346 = vrot.lane.b32.xlu1 %v1165_v0, %s1012_s15  ;;  %s1013_s16 = smov 112   ;;  %v357_v14 = vld [vmem:[%s294_s29] sm:$0xff]  ;;  %s1014_s24 = smov 1   ;;  %vm376_vm4 = vcmask 1048448   ;;  %v1016_v29 = vmov 0  }
  0x31   : > { %362 = vrot.lane.b32.xlu0 %v1165_v0, %s1013_s16  ;;  %373 = vrot.lane.b32.xlu2 %v371_v1, %s1013_s16  ;;  %v1173_v4 = vand.u32 127, %v350_v3  ;;  %s1015_s30 = smov 127   ;;  %v510_v27 = vld [vmem:[%s1273_s4] sm:$0xff]  ;;  %s738_s13 = sshll.u32 %s1002_s21, 4 }
  0x32   : > { %816 = vset.pattern.permute.xlu1 %v1016_v29  ;;  %817 = vset.pattern.permute.xlu0 %v1016_v29  ;;  %v495_v45 = vld [vmem:[%s1272_s3] sm:$0xff]  ;;  %s580_s9 = scalar_lea.hbm %s1274_s5, %s738_s13  ;;  %s341_s7 = scalar_lea.vmem [#allocation9], %s726_s8 }
  0x33   : > { %v1176_v5 = vand.u32 15, %v1173_v4  ;;  %v382_v9 = vadd.s32 128, %v1173_v4  ;;  %vm352_vm0 = vcmp.lt.s32.totalorder %v1173_v4, 16  ;;  %vm366_vm1 = vcmp.lt.s32.totalorder %v1173_v4, 112  ;;  %s582_s20 = sshll.u32 %s341_s7, 4  ;;  %s584_s11 = sshll.u32 %s580_s9, 4  ;;  %s583_s20 = int_to_ptr.vmem [resolvable:$true] %s582_s20  ;;  %s585_s11 = int_to_ptr.hbm [resolvable:$true] %s584_s11 }
  0x34   : > { %vm474_vm6 = vcmp.lt.s32.totalorder %v1173_v4, 127  ;;  %vm447_vm9 = vcmp.lt.s32.totalorder %v1173_v4, 1  ;;  %s567_s21 = scalar_lea.sflag [#allocation5], %s1149_s1  ;;  %s938_s12 = sshra.s32 %s585_s11, 4  ;;  %s939_s12 = int_to_ptr.hbm [resolvable:$true] %s938_s12 }
  0x35   : > { %v411_v8 = vand.u32 1, %v1176_v5  ;;  %v1186_v11 = vand.u32 15, %v382_v9  ;;  %vm468_vm7 = vcmp.eq.s32.totalorder %v1176_v5, 15  ;;  %vm441_vm12 = vcmp.eq.s32.totalorder %v1176_v5, 0  ;;  %s940_s29 = scalar_lea.hbm %s939_s12, 16  ;;  %s944_s8 = scalar_lea.hbm %s1274_s5, 32 }
  0x36   : > { %vm818_vm10 = vmneg %vm468_vm7  ;;  %p941_p4 = scmp.ne.s32.totalorder %s939_s12, %s940_s29  ;;  %p945_p7 = scmp.lt.s32.totalorder %s939_s12, %s1274_s5 }
  0x37   : > { %vm1182_vm2 = vcmp.eq.s32.totalorder %v411_v8, 1  ;;  %v418_v20 = vand.u32 1, %v1186_v11  ;;  %vm469_vm8 = vcmp.eq.s32.totalorder %v1186_v11, 15  ;;  %vm442_vm13 = vcmp.eq.s32.totalorder %v1186_v11, 0  ;;  %vm826_vm14 = vmneg %vm441_vm12  ;;  %p946_p8 = scmp.lt.s32.totalorder %s944_s8, %s940_s29 }
  0x38   : > { %348 = vrot.lane.b32.xlu1 %v1169_v2, %s1012_s15  ;;  %vm820_vm11 = vmneg %vm469_vm8  ;;  %p942_p5 = pnand %p941_p4, %p1102_p9 }
  0x39   : > { %364 = vrot.lane.b32.xlu0 %v1169_v2, %s1013_s16  ;;  %vm432_vm5 = vcmp.eq.s32.totalorder %v418_v20, 1  ;;  %vm828_vm15 = vmneg %vm442_vm13  ;;  %p947_p10 = por %p946_p8, %p945_p7 }
  0x3a   : > { %p943_p6 = pneg %p942_p5 }
  0x3c   : > { %p948_p13 = pnand %p947_p10, %p943_p6 }
  0x8b   : > { %v374_v21 = vpop.permute.xlu2 %373 }
  0xa2   : > { %v347_v6 = vpop.permute.xlu1 %346 }
  0xa3   : > { %v363_v7 = vpop.permute.xlu0 %362 }
  0xaa   : > { %v349_v12 = vpop.permute.xlu1 %348 }
  0xab   : > { %v365_v13 = vpop.permute.xlu0 %364  ;;  %v1188_v15 = vsel %vm352_vm0, %v347_v6, %v349_v12  ;;  %v354_v16 = vsel %vm352_vm0, %v349_v12, %v347_v6  ;;  %vm516_vm0 = vcmask 457728  }
  0xac   : > { %v1190_v17 = vsel %vm366_vm1, %v363_v7, %v365_v13  ;;  %355 = vst [vmem:[#allocation2] sm:$0xff] %v354_v16  ;;  %v368_v19 = vsel %vm366_vm1, %v365_v13, %v363_v7  ;;  %v438_v22 = vsel %vm432_vm5, %v1188_v15, %v1169_v2 }
  0xad   : > { %v439_v18 = vsel %vm1182_vm2, %v1165_v0, %v1190_v17  ;;  %359 = vst.msk [vmem:[#allocation2] sm:$0xff] %vm358_vm3, %v357_v14 }
  0xae   : > { %458 = vrot.lane.b32.xlu0 %v439_v18, %s1014_s24  ;;  %485 = vrot.lane.b32.xlu2 %v439_v18, %s1015_s30  ;;  %370 = vst [vmem:[#allocation2 + $0x28] sm:$0xff] %v368_v19 }
  0xaf   : > { %377 = vst.msk [vmem:[#allocation2 + $0x28] sm:$0xff] %vm376_vm4, %v374_v21 }
  0xb4   : > { %v378_v23 = vld [vmem:[#allocation2] sm:$0xff] }
  0xb5   : > { %v437_v24 = vsel %vm1182_vm2, %v378_v23, %v1165_v0 }
  0xb6   : > { %472 = vrot.lane.b32.xlu2 %v438_v22, %s1015_s30  ;;  %470 = vrot.lane.b32.xlu1 %v437_v24, %s1015_s30  ;;  %v381_v25 = vld [vmem:[#allocation2 + $0x28] sm:$0xff] }
  0xb7   : > { %v440_v26 = vsel %vm432_vm5, %v1169_v2, %v381_v25 }
  0xb8   : > { %487 = vrot.lane.b32.xlu0 %v440_v26, %s1015_s30 }
  0xbe   : > { %443 = vrot.lane.b32.xlu2 %v437_v24, %s1014_s24  ;;  %460 = vrot.lane.b32.xlu1 %v440_v26, %s1014_s24 }
  0xc0   : > { %445 = vrot.lane.b32.xlu0 %v438_v22, %s1014_s24 }
  0xc6   : > { %513 = vperm.xlu1 %816, %v510_v27  }
 0x108   : > { %v486_v28 = vpop.permute.xlu2 %485 }
 0x110   : > { %v473_v31 = vpop.permute.xlu2 %472 }
 0x118   : > { %v444_v41 = vpop.permute.xlu2 %443 }
 0x120   : > { %v459_v30 = vpop.permute.xlu0 %458 }
 0x128   : > { %v471_v32 = vpop.permute.xlu1 %470 }
 0x129   : > { %v475_v33 = vsel %vm474_vm6, %v471_v32, %v473_v31  ;;  %v476_v34 = vsel %vm474_vm6, %v473_v31, %v471_v32 }
 0x12a   : > { %v488_v35 = vpop.permute.xlu0 %487 }
 0x12b   : > { %v489_v36 = vsel %vm474_vm6, %v486_v28, %v488_v35  ;;  %v490_v37 = vsel %vm474_vm6, %v488_v35, %v486_v28 }
 0x12c   : > { %819 = vmatpush.msk.msra.mxu0 %vm818_vm10, %v489_v36  ;;  %821 = vmatpush.msk.msra.mxu1 %vm820_vm11, %v490_v37 }
 0x12e   : > { %823 = vmatpush.msk.msra.mxu0 %vm818_vm10, %v475_v33  ;;  %825 = vmatpush.msk.msra.mxu1 %vm820_vm11, %v476_v34 }
 0x130   : > { %v461_v38 = vpop.permute.xlu1 %460 }
 0x131   : > { %v462_v39 = vsel %vm447_vm9, %v459_v30, %v461_v38  ;;  %v463_v40 = vsel %vm447_vm9, %v461_v38, %v459_v30 }
 0x132   : > { %v446_v42 = vpop.permute.xlu0 %445  ;;  %827 = vmatpush.msk.msra.mxu0 %vm826_vm14, %v463_v40  ;;  %829 = vmatpush.msk.msra.mxu1 %vm828_vm15, %v462_v39 }
 0x133   : > { %v448_v43 = vsel %vm447_vm9, %v444_v41, %v446_v42  ;;  %v449_v44 = vsel %vm447_vm9, %v446_v42, %v444_v41 }
 0x134   : > { %831 = vmatpush.msk.msra.mxu0 %vm826_vm14, %v449_v44  ;;  %833 = vmatpush.msk.msra.mxu1 %vm828_vm15, %v448_v43 }
 0x136   : > { %533 = vmatpush.msra.mxu0 %v1190_v17  ;;  %553 = vmatpush.msra.mxu1 %v381_v25 }
 0x138   : > { %534 = vmatpush.msra.mxu0 %v1165_v0  ;;  %554 = vmatpush.msra.mxu1 %v1169_v2  ;;  %v514_v46 = vpop.permute.xlu1 %513 }
 0x13a   : > { %535 = vmatpush.msra.mxu0 %v378_v23  ;;  %555 = vmatpush.msra.mxu1 %v1188_v15 }
 0x13b   : > { %730 = vmatmul.msk.f32.vlgmr.msra.gmra.mxu0 %vm516_vm0, %v495_v45  ;;  %731 = vmatmul.msk.f32.vlgmr.msra.gmra.mxu1 %vm516_vm0, %v495_v45 }
 0x1b8   : > { %v537_v47 = vpop.f32.mrf.mxu0  ;;  %v557_v48 = vpop.f32.mrf.mxu1 }
 0x1b9   : > { %v538_v49 = vadd.f32 %v537_v47, %v514_v46  ;;  %v558_v50 = vadd.f32 %v557_v48, %v514_v46 }
 0x1bb   : > { %v560_v51 = vadd.f32 %v538_v49, %v1165_v0  ;;  %v561_v52 = vadd.f32 %v558_v50, %v1169_v2 }
 0x1bd   : > { %v562_v53 = vmax.f32 %v560_v51, 0.0  ;;  %v563_v54 = vmax.f32 %v561_v52, 0.0 }
 0x1bf   : > { %564 = vst [vmem:[%s341_s7] sm:$0xff] %v562_v53 }
 0x1c0   : > { %565 = vst [vmem:[%s341_s7 + $0x8] sm:$0xff] %v563_v54 }
 0x1c1   : > { %951 = shalt.err (!%p948_p13)
}
 0x1c2   : > { %745 = dma.vmem_to_hbm [thread:$0]  (%p1102_p9), %s583_s20, 256, %s585_s11, %s567_s21  }
 0x1c3 PF: > { %s596_s30 = sand.u32 1, %s990_s18   ;;  %p758_p0 = pnand %p717_p12, %p1109_p11 }
 0x1c4   : > { %s597_s25 = scalar_lea.sflag [#allocation5], %s596_s30 }
 0x1c5   : > { %p759_p1 = pneg %p758_p0 }
 0x1c7   : > { %985 = dma.done.wait (%p759_p1), %s597_s25, 256  }
 0x1c8   : > { %987 = vsyncadd (%p759_p1), %s597_s25, 4294967040  ;;  %s24_s23 = sadd.s32 1, %s1010_s23   ;;  %s1293_s10 = sld [smem:[#allocation13_spill]] }
 0x1c9   : > { %p21_p2 = scmp.ge.s32.totalorder %s24_s23, 4   ;;  %s1294_s20 = sld [smem:[#allocation15_spill]] }
 0x1ca   : > { %s1295_s6 = sld [smem:[#allocation14_spill]]  ;;  %s1296_s18 = smov %s994_s19 }
 0x1cb   : > { %s1298_s21 = smov %s1006_s22 }
 0x1cc   :  { %23 = sbr.rel (!%p21_p2) target bundleno = 10 (0xa), region = 109 }
 0x1ce   : > { %s1297_s19 = smov %s1293_s10 }
 0x1d0   : > { %s1299_s22 = smov %s1295_s6 }
 0x1d1   :  { %603 = vsyncpa [#allocation4], 1 }
 0x1d2   :  { %605 = vsyncpa [#allocation4 + $0x1], 1 }
 0x1d3   :  { %606 = vsyncpa [#allocation7], 1 }
 0x1d4   :  { %608 = vsyncpa [#allocation7 + $0x1], 1 }
 0x1d5   :  { %609 = vsyncpa [#allocation5], 1 }
 0x1d6   :  { %611 = vsyncpa [#allocation5 + $0x1], 1 }

</bundles_post_ra>
